<compile_context>
chip_gen: v6e
topology: v6e:2x2x1
jax: 0.10.0
libtpu: 0.0.40
codegen_flags: <defaults>
</compile_context>

<pallas_src>
import functools

import jax
import jax.numpy as jnp
import numpy as np
from jax.experimental import pallas as pl
from jax.experimental.pallas import tpu as pltpu

_VMEM_LIMIT = 32 * 1024 * 1024  # conservative: fits v7x's smaller VMEM


def _reverse_lanes(x):
    """Reverse the last (lane) axis of a 2-D block, in its native dtype."""
    w = x.shape[-1]
    col = jax.lax.broadcasted_iota(jnp.int32, x.shape, x.ndim - 1)
    return jnp.take_along_axis(x, (w - 1) - col, axis=-1,
                               mode="promise_in_bounds")


def _flip_pair_kernel(img_ref, tgt_ref, img_out_ref, tgt_out_ref):
    img_out_ref[...] = _reverse_lanes(img_ref[...])
    tgt_out_ref[...] = _reverse_lanes(tgt_ref[...])


def _flip_one_kernel(x_ref, o_ref):
    o_ref[...] = _reverse_lanes(x_ref[...])


def _row_block_sizes(rows_big, rows_small, width, itemsize, block_bytes):
    """Row tiles for two slabs sharing one grid (rows_big % rows_small == 0)."""
    ratio = rows_big // rows_small
    # Rows of the small slab whose big-slab counterpart fits ~block_bytes.
    tr_small = max(1, block_bytes // (width * itemsize * ratio))
    if tr_small >= rows_small or rows_small < 8:
        tr_small = rows_small                   # single block: full-dim exception
    else:
        tr_small = max(8, (tr_small // 8) * 8)  # sublane (8-row) aligned tile
    tr_big = tr_small * ratio
    num_blocks = pl.cdiv(rows_small, tr_small)
    return tr_big, tr_small, num_blocks


def _hflip_single(x, *, block_bytes):
    """Tiled, pipelined horizontal flip of a single tensor (last axis)."""
    w = x.shape[-1]
    x2 = x.reshape(-1, w)
    rows = x2.shape[0]
    itemsize = jnp.dtype(x.dtype).itemsize
    tr, _, num_blocks = _row_block_sizes(rows, rows, w, itemsize, block_bytes)
    out = pl.pallas_call(
        _flip_one_kernel,
        out_shape=jax.ShapeDtypeStruct((rows, w), x.dtype),
        grid=(num_blocks,),
        in_specs=[pl.BlockSpec((tr, w), lambda i: (i, 0))],
        out_specs=pl.BlockSpec((tr, w), lambda i: (i, 0)),
        compiler_params=pltpu.CompilerParams(
            dimension_semantics=("parallel",),
            vmem_limit_bytes=_VMEM_LIMIT),
        cost_estimate=pl.CostEstimate(
            flops=0, transcendentals=0,
            bytes_accessed=int(2 * x2.size * itemsize)),
    )(x2)
    return out.reshape(x.shape)


def _flip_both(image, target, *, block_bytes):
    """Flip image and target along their last axis with one fused pallas_call."""
    w = image.shape[-1]
    wt = target.shape[-1]
    rows_img = image.size // w
    rows_tgt = target.size // wt
    if wt != w or rows_img % rows_tgt != 0:
        # Layouts don't share a common row grid; flip each one separately.
        return (_hflip_single(image, block_bytes=block_bytes),
                _hflip_single(target, block_bytes=block_bytes))

    img2 = image.reshape(rows_img, w)
    tgt2 = target.reshape(rows_tgt, w)
    itemsize = jnp.dtype(image.dtype).itemsize
    tr_img, tr_tgt, num_blocks = _row_block_sizes(
        rows_img, rows_tgt, w, itemsize, block_bytes)
    bytes_accessed = 2 * (image.size * jnp.dtype(image.dtype).itemsize
                          + target.size * jnp.dtype(target.dtype).itemsize)

    img_out, tgt_out = pl.pallas_call(
        _flip_pair_kernel,
        out_shape=(jax.ShapeDtypeStruct((rows_img, w), image.dtype),
                   jax.ShapeDtypeStruct((rows_tgt, w), target.dtype)),
        grid=(num_blocks,),
        in_specs=[pl.BlockSpec((tr_img, w), lambda i: (i, 0)),
                  pl.BlockSpec((tr_tgt, w), lambda i: (i, 0))],
        out_specs=(pl.BlockSpec((tr_img, w), lambda i: (i, 0)),
                   pl.BlockSpec((tr_tgt, w), lambda i: (i, 0))),
        compiler_params=pltpu.CompilerParams(
            dimension_semantics=("parallel",),
            vmem_limit_bytes=_VMEM_LIMIT),
        cost_estimate=pl.CostEstimate(
            flops=0, transcendentals=0, bytes_accessed=int(bytes_accessed)),
    )(img2, tgt2)
    return img_out.reshape(image.shape), tgt_out.reshape(target.shape)


@functools.partial(jax.jit, static_argnames=("p", "block_bytes"))
def random_horizontal_flip(key, image, target, p=0.5,
                           block_bytes=2 * 1024 * 1024):
    """JAX/Pallas equivalent of RandomHorizontalFlip.forward(image, target)."""
    do_flip = jax.random.uniform(key, ()) < p        # torch.rand(1) < p
    return jax.lax.cond(
        do_flip,
        lambda im, tg: _flip_both(im, tg, block_bytes=block_bytes),
        lambda im, tg: (im, tg),
        image, target)


if __name__ == "__main__":
    key = jax.random.PRNGKey(0)
    k_img, k_tgt, k_flip = jax.random.split(key, 3)

    # Small but lane-aligned shapes: W=128 keeps output stores lane-dense.
    N, C, H, W = 2, 4, 16, 128
    image = jax.random.normal(k_img, (N, C, H, W), dtype=jnp.float32)
    target = jax.random.normal(k_tgt, (N, 1, H, W), dtype=jnp.float32)

    # Small block_bytes so even this tiny demo exercises a multi-step,
    # double-buffered, parallel grid: 4 steps of (32,128) image / (8,128)
    # target tiles.
    for p in (0.5, 1.0, 0.0):
        img_out, tgt_out = random_horizontal_flip(
            k_flip, image, target, p=p, block_bytes=16 * 1024)
        jax.block_until_ready((img_out, tgt_out))

        flip = bool(jax.random.uniform(k_flip, ()) < p)
        ref_img = jnp.flip(image, axis=-1) if flip else image
        ref_tgt = jnp.flip(target, axis=-1) if flip else target
        # Pure data movement -> results are bit-exact.
        assert np.array_equal(np.asarray(img_out), np.asarray(ref_img)), p
        assert np.array_equal(np.asarray(tgt_out), np.asarray(ref_tgt)), p

    print("KERNEL_OK")
</pallas_src>

<mosaic_0001>
module attributes {stable_mosaic.version = 11 : i64} {
  func.func @_flip_pair_kernel(%arg0: i32, %arg1: memref<32x128xf32, #tpu.memory_space<vmem>>, %arg2: memref<8x128xf32, #tpu.memory_space<vmem>>, %arg3: memref<32x128xf32, #tpu.memory_space<vmem>>, %arg4: memref<8x128xf32, #tpu.memory_space<vmem>>) attributes {dimension_semantics = [#tpu.dimension_semantics<parallel>], iteration_bounds = array<i64: 4>, scalar_prefetch = 0 : i64, scratch_operands = 0 : i64, tpu.core_type = #tpu.core_type<tc>, window_params = [{transform_indices = @transform_0, window_bounds = array<i64: 32, 128>}, {transform_indices = @transform_1, window_bounds = array<i64: 8, 128>}, {transform_indices = @transform_2, window_bounds = array<i64: 32, 128>}, {transform_indices = @transform_3, window_bounds = array<i64: 8, 128>}]} {
    %c0 = arith.constant 0 : index
    %c0_0 = arith.constant 0 : index
    %0 = vector.load %arg1[%c0, %c0_0] : memref<32x128xf32, #tpu.memory_space<vmem>>, vector<32x128xf32>
    %1 = tpu.iota {dimensions = array<i32: 1>} : vector<32x128xi32>
    %c127_i32 = arith.constant 127 : i32
    %2 = vector.broadcast %c127_i32 : i32 to vector<32x128xi32>
    %3 = arith.subi %2, %1 : vector<32x128xi32>
    %4 = vector.shape_cast %3 : vector<32x128xi32> to vector<32x128x1xi32>
    %5 = vector.shape_cast %4 : vector<32x128x1xi32> to vector<32x128xi32>
    %6 = tpu.dynamic_gather %0[%5] in [1] : vector<32x128xf32>, vector<32x128xi32> -> vector<32x128xf32>
    %c0_1 = arith.constant 0 : index
    %c0_2 = arith.constant 0 : index
    %7 = vector.load %arg3[%c0_1, %c0_2] : memref<32x128xf32, #tpu.memory_space<vmem>>, vector<32x128xf32>
    tpu.vector_store %arg3[%c0_1, %c0_2], %6 {strides = array<i32>} : memref<32x128xf32, #tpu.memory_space<vmem>>, vector<32x128xf32>,
    %c0_3 = arith.constant 0 : index
    %c0_4 = arith.constant 0 : index
    %8 = vector.load %arg2[%c0_3, %c0_4] : memref<8x128xf32, #tpu.memory_space<vmem>>, vector<8x128xf32>
    %9 = tpu.iota {dimensions = array<i32: 1>} : vector<8x128xi32>
    %c127_i32_5 = arith.constant 127 : i32
    %10 = vector.broadcast %c127_i32_5 : i32 to vector<8x128xi32>
    %11 = arith.subi %10, %9 : vector<8x128xi32>
    %12 = vector.shape_cast %11 : vector<8x128xi32> to vector<8x128x1xi32>
    %13 = vector.shape_cast %12 : vector<8x128x1xi32> to vector<8x128xi32>
    %14 = tpu.dynamic_gather %8[%13] in [1] : vector<8x128xf32>, vector<8x128xi32> -> vector<8x128xf32>
    %c0_6 = arith.constant 0 : index
    %c0_7 = arith.constant 0 : index
    %15 = vector.load %arg4[%c0_6, %c0_7] : memref<8x128xf32, #tpu.memory_space<vmem>>, vector<8x128xf32>
    tpu.vector_store %arg4[%c0_6, %c0_7], %14 {strides = array<i32>} : memref<8x128xf32, #tpu.memory_space<vmem>>, vector<8x128xf32>,
    return
  }
  func.func @transform_0(%arg0: i32) -> (i32, i32) {
    %c0_i32 = arith.constant 0 : i32
    %c0_i32_0 = arith.constant 0 : i32
    return %arg0, %c0_i32 : i32, i32
  }
  func.func @transform_1(%arg0: i32) -> (i32, i32) {
    %c0_i32 = arith.constant 0 : i32
    %c0_i32_0 = arith.constant 0 : i32
    return %arg0, %c0_i32 : i32, i32
  }
  func.func @transform_2(%arg0: i32) -> (i32, i32) {
    %c0_i32 = arith.constant 0 : i32
    %c0_i32_0 = arith.constant 0 : i32
    return %arg0, %c0_i32 : i32, i32
  }
  func.func @transform_3(%arg0: i32) -> (i32, i32) {
    %c0_i32 = arith.constant 0 : i32
    %c0_i32_0 = arith.constant 0 : i32
    return %arg0, %c0_i32 : i32, i32
  }
}

</mosaic_0001>

<bundles_post_ra>
// kernel: branch_1_fun.1
= control target key start
LH: loop header
LB: loop body
LE: loop exit
PB: predicated region body
PF: predicated region fallthrough
CT: control target
= control target key end

     0   :  { %9 = vsyncpa [#allocation3], 0  ;;  %s686_s0 = inlined_call_operand.vmem [shape: f32[128,128], index: 0, kind: input, shape index: {}]   ;;  %s687_s1 = inlined_call_operand.vmem [shape: f32[32,128], index: 1, kind: input, shape index: {}]   ;;  %s688_s2 = inlined_call_operand.hbm [shape: f32[128,128], index: 2, kind: output, shape index: {0}]   ;;  %s689_s3 = inlined_call_operand.hbm [shape: f32[32,128], index: 3, kind: output, shape index: {1}]  }
   0x1   :  { %11 = vsyncpa [#allocation3 + $0x1], 0 }
   0x2   :  { %12 = vsyncpa [#allocation5], 0 }
   0x3   :  { %14 = vsyncpa [#allocation5 + $0x1], 0  ;;  %s547_s12 = smov 0   ;;  %s549_s13 = smov 0  }
   0x4   :  { %s551_s14 = smov 0   ;;  %s553_s15 = smov 0  }
   0x5 LB: > { %s568_s16 = sadd.s32 4294967295, %s521_s15   ;;  %s366_s17 = sadd.s32 4294967294, %s521_s15   ;;  %s521_s15 = sphi %s553_s15, %s695_s15   ;;  %s517_s14 = sphi %s551_s14, %s694_s14   ;;  %s513_s13 = sphi %s549_s13, %s693_s13   ;;  %s509_s12 = sphi %s547_s12, %s692_s12  }
   0x6   : > { %s572_s18 = sadd.s32 1, %s521_s15   ;;  %s79_s19 = sadd.s32 1, %s517_s14 }
   0x7   : > { %s76_s20 = ssub.s32 %s521_s15, %s572_s18  ;;  %p89_p0 = scmp.ne.s32.totalorder %s517_s14, %s513_s13 }
   0x8   : > { %p77_p1 = scmp.eq.s32.totalorder %s76_s20, 0  ;;  %p90_p2 = scmp.eq.s32.totalorder %s568_s16, 3 }
   0x9   : > { %p95_p3 = scmp.ne.s32.totalorder %s513_s13, %s509_s12  ;;  %p96_p4 = scmp.eq.s32.totalorder %s366_s17, 3 }
   0xa   : > { %s583_s21 = scalar_select %p77_p1, %s517_s14, %s79_s19  }
   0xb   : > { %p585_p5 = por %p90_p2, %p89_p0  ;;  %p589_p6 = por %p96_p4, %p95_p3 }
   0xc   : > { %p369_p7 = scmp.ge.s32.totalorder %s521_s15, 1  ;;  %p156_p8 = scmp.lt.s32.totalorder %s521_s15, 5 }
   0xe   : > { %p157_p9 = pnand %p369_p7, %p156_p8 }
   0xf   : > { %s372_s24 = sshll.u32 (!%p157_p9), %s568_s16, 2  ;;  %p195_p10 = scmp.lt.s32.totalorder (!%p157_p9), %s568_s16, 3 }
  0x10   : > { %160 = sbr.rel (%p157_p9) target bundleno = 195 (0xc3), region = 28  ;;  %p190_p11 = scmp.lt.s32.totalorder (!%p157_p9), %s372_s24, 15 }
  0x11   : > { %s605_s7 = sand.u32 (!%p157_p9), 1, %s513_s13   ;;  %s382_s17 = sshll.u32 (!%p157_p9), %s568_s16, 9 }
  0x12   : > { %s370_s8 = sshll.u32 (!%p157_p9), %s605_s7, 5  ;;  %s371_s9 = sshll.u32 (!%p157_p9), %s605_s7, 3 }
  0x13   : > { %s181_s10 = scalar_lea.vmem (!%p157_p9), [#allocation2], %s370_s8  ;;  %s612_s19 = scalar_lea.vmem (!%p157_p9), [#allocation4], %s371_s9 }
  0x14   : > { %s247_s11 = sshll.u32 (!%p157_p9), %s181_s10, 4  ;;  %s263_s20 = sshll.u32 (!%p157_p9), %s612_s19, 4  ;;  %s610_s11 = int_to_ptr.vmem [resolvable:$true] %s247_s11  ;;  %s621_s20 = int_to_ptr.vmem [resolvable:$true] %s263_s20 }
  0x15   : > { %v204_v0 = vlaneseq  ;;  %s697_s24 = smov (!%p190_p11, %s372_s24), 15  ;;  %s379_s27 = sshll.u32 %s568_s16, 7 }
  0x16   : > { %s196_s25 = scalar_select %p195_p10, %s568_s16, 3 }
  0x17   : > { %v205_v1 = vand.u32 127, %v204_v0  ;;  %s373_s26 = sshll.u32 %s697_s24, 3  ;;  %s229_s28 = scalar_lea.sflag [#allocation3], %s605_s7 }
  0x18   : > { %s193_s29 = scalar_lea.vmem %s686_s0, %s373_s26  ;;  %s374_s30 = sshll.u32 %s196_s25, 3 }
  0x19   : > { %v206_v2 = vsub.s32 127, %v205_v1  ;;  %v202_v3 = vld [vmem:[%s193_s29 + $0x10] sm:$0xff]  ;;  %v200_v4 = vld [vmem:[%s193_s29] sm:$0xff]  ;;  %v203_v5 = vld [vmem:[%s193_s29 + $0x18] sm:$0xff]  ;;  %s198_s6 = scalar_lea.vmem %s687_s1, %s374_s30  ;;  %s618_s26 = scalar_lea.hbm %s688_s2, %s382_s17 }
  0x1a   : > { %v201_v6 = vld [vmem:[%s193_s29 + $0x8] sm:$0xff]  ;;  %v223_v7 = vld [vmem:[%s198_s6] sm:$0xff]  ;;  %s431_s29 = scalar_lea.vmem %s610_s11, 512  ;;  %s523_s30 = smov [#allocation2]  }
  0x1b   : > { %430 = vset.pattern.permute.xlu1 %v206_v2  ;;  %429 = vset.pattern.permute.xlu0 %v206_v2  ;;  %p432_p12 = scmp.ne.s32.totalorder %s610_s11, %s431_s29  ;;  %s435_s4 = sshll.u32 %s523_s30, 4  ;;  %s436_s4 = int_to_ptr.vmem [resolvable:$false] %s435_s4 }
  0x1c   : > { %s437_s5 = scalar_lea.vmem %s436_s4, 1024  ;;  %p438_p1 = scmp.lt.s32.totalorder %s610_s11, %s436_s4 }
  0x1d   : > { %p433_p13 = pnand %p432_p12, %p585_p5  ;;  %p439_p2 = scmp.lt.s32.totalorder %s437_s5, %s431_s29 }
  0x1f   : > { %214 = vperm.xlu1 %430, %v202_v3   ;;  %208 = vperm.xlu0 %429, %v200_v4   ;;  %p434_p0 = pneg %p433_p13  ;;  %p440_p3 = por %p439_p2, %p438_p1 }
  0x21   : > { %p441_p4 = pnand %p440_p3, %p434_p0 }
  0x23   : > { %217 = vperm.xlu1 %430, %v203_v5   ;;  %211 = vperm.xlu0 %429, %v201_v6  }
  0x27   : > { %225 = vperm.xlu0 %429, %v223_v7  }
  0x9a   : > { %v215_v8 = vpop.permute.xlu1 %214  ;;  %v209_v9 = vpop.permute.xlu0 %208 }
  0x9b   : > { %221 = vst [vmem:[%s181_s10 + $0x10] sm:$0xff] %v215_v8  ;;  %219 = vst [vmem:[%s181_s10] sm:$0xff] %v209_v9 }
  0x9e   : > { %v218_v10 = vpop.permute.xlu1 %217  ;;  %v212_v11 = vpop.permute.xlu0 %211 }
  0x9f   : > { %222 = vst [vmem:[%s181_s10 + $0x18] sm:$0xff] %v218_v10  ;;  %220 = vst [vmem:[%s181_s10 + $0x8] sm:$0xff] %v212_v11 }
  0xa0   : > { %444 = shalt.err (!%p441_p4)
}
  0xa1   : > { %s445_s6 = scalar_lea.hbm %s618_s26, 512  ;;  %s449_s10 = scalar_lea.hbm %s688_s2, 2048 }
  0xa2   : > { %p446_p7 = scmp.ne.s32.totalorder %s618_s26, %s445_s6  ;;  %p450_p10 = scmp.lt.s32.totalorder %s618_s26, %s688_s2 }
  0xa3   : > { %p451_p11 = scmp.lt.s32.totalorder %s449_s10, %s445_s6 }
  0xa4   : > { %p447_p8 = pnand %p446_p7, %p585_p5 }
  0xa5   : > { %p452_p12 = por %p451_p11, %p450_p10 }
  0xa6   : > { %p448_p9 = pneg %p447_p8 }
  0xa8   : > { %p453_p13 = pnand %p452_p12, %p448_p9 }
  0xaa   : > { %456 = shalt.err (!%p453_p13)
}
  0xab   : > { %s524_s25 = smov 128   ;;  %s525_s29 = smov 8   ;;  %v226_v12 = vpop.permute.xlu0 %225 }
  0xac   : > { %383 = dma.vmem_to_hbm [thread:$0]  (%p585_p5), %s610_s11, 512, %s618_s26, %s229_s28, %s524_s25, %s524_s25, %s525_s29  }
  0xad   : > { %s261_s5 = scalar_lea.hbm %s689_s3, %s379_s27  ;;  %227 = vst [vmem:[%s612_s19] sm:$0xff] %v226_v12  ;;  %s234_s6 = scalar_lea.sflag [#allocation5], %s605_s7 }
  0xae   : > { %s457_s8 = scalar_lea.vmem %s621_s20, 128  ;;  %s526_s9 = smov [#allocation4]  }
  0xaf   : > { %p458_p0 = scmp.ne.s32.totalorder %s621_s20, %s457_s8  ;;  %s461_s10 = sshll.u32 %s526_s9, 4  ;;  %s462_s10 = int_to_ptr.vmem [resolvable:$false] %s461_s10 }
  0xb0   : > { %s463_s17 = scalar_lea.vmem %s462_s10, 256  ;;  %p464_p3 = scmp.lt.s32.totalorder %s621_s20, %s462_s10 }
  0xb1   : > { %p459_p1 = pnand %p458_p0, %p585_p5  ;;  %p465_p4 = scmp.lt.s32.totalorder %s463_s17, %s457_s8 }
  0xb3   : > { %p460_p2 = pneg %p459_p1  ;;  %p466_p7 = por %p465_p4, %p464_p3 }
  0xb5   : > { %p467_p8 = pnand %p466_p7, %p460_p2 }
  0xb7   : > { %470 = shalt.err (!%p467_p8)
}
  0xb8   : > { %s471_s16 = scalar_lea.hbm %s261_s5, 128  ;;  %s475_s19 = scalar_lea.hbm %s689_s3, 512 }
  0xb9   : > { %p472_p9 = scmp.ne.s32.totalorder %s261_s5, %s471_s16  ;;  %p476_p12 = scmp.lt.s32.totalorder %s261_s5, %s689_s3 }
  0xba   : > { %p477_p13 = scmp.lt.s32.totalorder %s475_s19, %s471_s16 }
  0xbb   : > { %p473_p10 = pnand %p472_p9, %p585_p5 }
  0xbc   : > { %p478_p0 = por %p477_p13, %p476_p12 }
  0xbd   : > { %p474_p11 = pneg %p473_p10 }
  0xbf   : > { %p479_p1 = pnand %p478_p0, %p474_p11 }
  0xc1   : > { %482 = shalt.err (!%p479_p1)
}
  0xc2   : > { %384 = dma.vmem_to_hbm [thread:$0]  (%p585_p5), %s621_s20, 128, %s261_s5, %s234_s6  }
  0xc3 PF: > { %p394_p2 = scmp.ge.s32.totalorder %s521_s15, 2  ;;  %s275_s28 = sand.u32 1, %s509_s12  }
  0xc4   : > { %s276_s24 = scalar_lea.sflag [#allocation3], %s275_s28 }
  0xc5   : > { %p388_p3 = pnand %p394_p2, %p589_p6 }
  0xc7   : > { %p389_p4 = pneg %p388_p3 }
  0xc9   : > { %500 = dma.done.wait (%p389_p4), %s276_s24, 512  }
  0xca   : > { %502 = vsyncadd (%p389_p4), %s276_s24, 4294966784  ;;  %s285_s25 = scalar_lea.sflag [#allocation5], %s275_s28 }
  0xcb   : > { %504 = dma.done.wait (%p389_p4), %s285_s25, 128  }
  0xcc   : > { %506 = vsyncadd (%p389_p4), %s285_s25, 4294967168  ;;  %p17_p5 = scmp.ge.s32.totalorder %s572_s18, 6   ;;  %s692_s12 = smov %s513_s13 }
  0xcd   : > { %s693_s13 = smov %s517_s14  ;;  %s694_s14 = smov %s583_s21 }
  0xce   : > { %s695_s15 = smov %s572_s18  ;;  %19 = sbr.rel (!%p17_p5) target bundleno = 5 (0x5), region = 83 }
  0xd3   :  { %290 = vsyncpa [#allocation3], 1 }
  0xd4   :  { %292 = vsyncpa [#allocation3 + $0x1], 1 }
  0xd5   :  { %293 = vsyncpa [#allocation5], 1 }
  0xd6   :  { %295 = vsyncpa [#allocation5 + $0x1], 1 }

</bundles_post_ra>
